<compile_context>
chip_gen: v5e
topology: v5e:2x2
jax: 0.10.0
libtpu: 0.0.40
codegen_flags: <defaults>
</compile_context>

<pallas_src>
import functools

import jax
import jax.numpy as jnp
from jax.experimental import pallas as pl
from jax.experimental.pallas import tpu as pltpu


LANE = 128
# ~8 MiB per block: double-buffered in+out => ~32 MiB of pipeline VMEM, which
# we allow explicitly via vmem_limit_bytes below (under v7x's 64 MiB physical
# and far under v5e/v6e's 128 MiB).  Amortizes the ~0.35 µs per-grid-step cost
# even against v7x's ~3.2 TB/s HBM.
BLOCK_BYTES = 8 * 1024 * 1024
VMEM_LIMIT_BYTES = 40 * 1024 * 1024


def _rescale_kernel(params_ref, x_ref, o_ref, *, output_range, compute_dtype):
    # params_ref lives in SMEM: [scale, shift] as float32 scalars.
    scale = params_ref[0].astype(compute_dtype)
    shift = params_ref[1].astype(compute_dtype)
    # For float inputs compute_dtype == x dtype, so the astype is a no-op and
    # the affine runs natively on the VPU.  Compute path is nowhere near the
    # memory bound, so no further micro-optimization here.
    y = x_ref[...].astype(compute_dtype) * scale + shift
    if output_range is not None:
        lo, hi = output_range
        y = jnp.clip(y, jnp.asarray(lo, y.dtype), jnp.asarray(hi, y.dtype))
    o_ref[...] = y.astype(o_ref.dtype)


def _affine_jnp(x, scale, shift, output_range, compute_dtype, out_dtype):
    """Plain-JAX affine+clamp, used only for the tiny ragged tail."""
    y = x.astype(compute_dtype) * scale + shift
    if output_range is not None:
        lo, hi = output_range
        y = jnp.clip(y, jnp.asarray(lo, y.dtype), jnp.asarray(hi, y.dtype))
    return y.astype(out_dtype)


def random_pixel_rescale(x, key, *, max_scale_change, max_shift, output_range=None):
    """JAX/Pallas equivalent of RandomPixelRescale.forward.

    x: NCHW array (any shape works — op is elementwise).
    key: jax PRNG key for the random scale/shift draw.
    """
    max_scale_change = min(abs(max_scale_change), 1.0)
    max_shift = abs(max_shift)

    orig_dtype = x.dtype
    # Float inputs: draw + compute in the input dtype (torch.rand(1, dtype=dtype)).
    # Integer inputs: promote to float32 for the affine, cast back at the end.
    # TODO(synk): final int cast truncates toward zero / can wrap without an
    # output_range clamp — mirrors a plain .type(dtype) cast, verify if
    # round-to-nearest is desired for integer images.
    if jnp.issubdtype(orig_dtype, jnp.floating):
        compute_dtype = orig_dtype
    else:
        compute_dtype = jnp.float32

    k_scale, k_shift = jax.random.split(key)
    scale = (1.0
             + 2.0 * max_scale_change * jax.random.uniform(k_scale, (), dtype=compute_dtype)
             - max_scale_change)
    shift = (2.0 * max_shift * jax.random.uniform(k_shift, (), dtype=compute_dtype)
             - max_shift)
    # Keep SMEM scalars in f32; kernel casts back to compute_dtype (exact round-trip).
    params = jnp.stack([scale.astype(jnp.float32), shift.astype(jnp.float32)])

    flat = x.reshape(-1)
    n = flat.shape[0]
    rem = n % LANE
    n_aligned = n - rem

    if n_aligned == 0:
        # Tiny (<128 element) unaligned input: cheaper in plain jnp than
        # padding a degenerate tile through the kernel.
        out_flat = _affine_jnp(flat, scale, shift, output_range, compute_dtype, orig_dtype)
        return out_flat.reshape(x.shape)

    # 128-aligned prefix reshapes to a lane-dense slab with no data movement.
    slab = flat[:n_aligned].reshape(-1, LANE)
    rows = slab.shape[0]

    # Dtype-aware tiling: minimum sublane packing (8 f32 / 16 bf16 / 32 int8),
    # target ~8 MiB blocks, ragged row tail handled by a cdiv grid + masking.
    itemsize = jnp.dtype(orig_dtype).itemsize
    min_rows = {4: 8, 2: 16, 1: 32}.get(itemsize, 8)
    target_rows = max(min_rows, BLOCK_BYTES // (LANE * itemsize))
    # v7x megacore: keep the grid at >= 2 blocks whenever the slab allows it so
    # the "parallel" axis actually shards across both TensorCores (no effect on
    # the single-TC v5e/v6e).
    if rows >= 2 * min_rows:
        half_rows = max(min_rows, (rows // 2 // min_rows) * min_rows)
        target_rows = min(target_rows, half_rows)
    tile_rows = min(target_rows, rows)
    tile_rows -= tile_rows % min_rows
    if tile_rows <= 0:
        # Tiny input: a single block equal to the full array dims is allowed.
        tile_rows = rows
    grid = (pl.cdiv(rows, tile_rows),)

    kernel = functools.partial(
        _rescale_kernel, output_range=output_range, compute_dtype=compute_dtype)

    out_slab = pl.pallas_call(
        kernel,
        out_shape=jax.ShapeDtypeStruct(slab.shape, orig_dtype),
        grid=grid,
        in_specs=[
            pl.BlockSpec(memory_space=pltpu.MemorySpace.SMEM),   # [scale, shift]
            pl.BlockSpec((tile_rows, LANE), lambda i: (i, 0)),   # x tile
        ],
        out_specs=pl.BlockSpec((tile_rows, LANE), lambda i: (i, 0)),
        compiler_params=pltpu.CompilerParams(
            dimension_semantics=("parallel",),
            vmem_limit_bytes=VMEM_LIMIT_BYTES),
        cost_estimate=pl.CostEstimate(
            flops=2 * n_aligned,
            transcendentals=0,
            bytes_accessed=2 * n_aligned * itemsize),
    )(params, slab)

    out_flat = out_slab.reshape(-1)
    if rem:
        # Ragged (<128 element) tail: compute in plain jnp and stitch on.
        # Replaces the old whole-tensor pad + output slice (two extra full HBM
        # passes) with a sub-vreg jnp op plus one stitch.
        # TODO(synk): with a donated output buffer a dynamic_update_slice would
        # make the stitch fully in-place; concatenate is fine for a tiny tail.
        tail = _affine_jnp(flat[n_aligned:], scale, shift, output_range,
                           compute_dtype, orig_dtype)
        out_flat = jnp.concatenate([out_flat, tail])
    return out_flat.reshape(x.shape)


if __name__ == "__main__":
    key = jax.random.PRNGKey(0)
    k_x, k_rng = jax.random.split(key)

    # NCHW input, matching the PyTorch convention.
    x = jax.random.uniform(k_x, (2, 4, 16, 16), dtype=jnp.float32)

    max_scale_change = 0.2
    max_shift = 0.1
    output_range = (0.0, 1.0)

    y = random_pixel_rescale(
        x, k_rng,
        max_scale_change=max_scale_change,
        max_shift=max_shift,
        output_range=output_range,
    )
    y = jax.block_until_ready(y)

    # Pure-JAX reference check of the affine + clamp semantics (same scalar draw).
    k_scale, k_shift = jax.random.split(k_rng)
    msc = min(abs(max_scale_change), 1.0)
    msh = abs(max_shift)
    scale = 1.0 + 2.0 * msc * jax.random.uniform(k_scale, (), dtype=x.dtype) - msc
    shift = 2.0 * msh * jax.random.uniform(k_shift, (), dtype=x.dtype) - msh
    ref = jnp.clip(x * scale + shift, output_range[0], output_range[1]).astype(x.dtype)
    assert y.shape == x.shape and y.dtype == x.dtype
    assert jnp.allclose(y, ref, atol=1e-6), "mismatch vs reference"

    print("KERNEL_OK")
</pallas_src>

<mosaic_0001>
module attributes {stable_mosaic.version = 11 : i64} {
  func.func @_rescale_kernel(%arg0: i32, %arg1: memref<2xf32, #tpu.memory_space<smem>>, %arg2: memref<8x128xf32, #tpu.memory_space<vmem>>, %arg3: memref<8x128xf32, #tpu.memory_space<vmem>>) attributes {dimension_semantics = [#tpu.dimension_semantics<parallel>], iteration_bounds = array<i64: 2>, scalar_prefetch = 0 : i64, scratch_operands = 0 : i64, tpu.core_type = #tpu.core_type<tc>, window_params = [{transform_indices = @transform_0, window_bounds = array<i64: 2>}, {transform_indices = @transform_1, window_bounds = array<i64: 8, 128>}, {transform_indices = @transform_2, window_bounds = array<i64: 8, 128>}]} {
    %c0 = arith.constant 0 : index
    %0 = memref.load %arg1[%c0] : memref<2xf32, #tpu.memory_space<smem>>
    %c1 = arith.constant 1 : index
    %1 = memref.load %arg1[%c1] : memref<2xf32, #tpu.memory_space<smem>>
    %c0_0 = arith.constant 0 : index
    %c0_1 = arith.constant 0 : index
    %2 = vector.load %arg2[%c0_0, %c0_1] : memref<8x128xf32, #tpu.memory_space<vmem>>, vector<8x128xf32>
    %3 = vector.broadcast %0 : f32 to vector<8x128xf32>
    %4 = arith.mulf %2, %3 : vector<8x128xf32>
    %5 = vector.broadcast %1 : f32 to vector<8x128xf32>
    %6 = arith.addf %4, %5 : vector<8x128xf32>
    %cst = arith.constant 0.000000e+00 : f32
    %cst_2 = arith.constant 1.000000e+00 : f32
    %7 = vector.broadcast %cst : f32 to vector<8x128xf32>
    %8 = arith.maximumf %7, %6 : vector<8x128xf32>
    %9 = vector.broadcast %cst_2 : f32 to vector<8x128xf32>
    %10 = arith.minimumf %9, %8 : vector<8x128xf32>
    %c0_3 = arith.constant 0 : index
    %c0_4 = arith.constant 0 : index
    %11 = vector.load %arg3[%c0_3, %c0_4] : memref<8x128xf32, #tpu.memory_space<vmem>>, vector<8x128xf32>
    tpu.vector_store %arg3[%c0_3, %c0_4], %10 {strides = array<i32>} : memref<8x128xf32, #tpu.memory_space<vmem>>, vector<8x128xf32>,
    return
  }
  func.func @transform_0(%arg0: i32) -> i32 {
    %c0_i32 = arith.constant 0 : i32
    %c0_i32_0 = arith.constant 0 : i32
    return %c0_i32 : i32
  }
  func.func @transform_1(%arg0: i32) -> (i32, i32) {
    %c0_i32 = arith.constant 0 : i32
    %c0_i32_0 = arith.constant 0 : i32
    return %arg0, %c0_i32 : i32, i32
  }
  func.func @transform_2(%arg0: i32) -> (i32, i32) {
    %c0_i32 = arith.constant 0 : i32
    %c0_i32_0 = arith.constant 0 : i32
    return %arg0, %c0_i32 : i32, i32
  }
}

</mosaic_0001>

<bundles_post_ra>
// kernel: tpu_custom_call.1
= control target key start
LH: loop header
LB: loop body
LE: loop exit
PB: predicated region body
PF: predicated region fallthrough
CT: control target
= control target key end

     0   :  { %7 = vsyncpa [#allocation5], 0  ;;  %s626_s0 = inlined_call_operand.hbm [shape: f32[2], index: 0, kind: input, shape index: {}]   ;;  %s627_s1 = inlined_call_operand.hbm [shape: f32[16,128], index: 1, kind: input, shape index: {}]   ;;  %s628_s2 = inlined_call_operand.hbm [shape: f32[16,128], index: 2, kind: output, shape index: {}]  }
   0x1   :  { %8 = vsyncpa [#allocation3], 0 }
   0x2   :  { %10 = vsyncpa [#allocation3 + $0x1], 0 }
   0x3   :  { %11 = vsyncpa [#allocation4], 0 }
   0x4   :  { %13 = vsyncpa [#allocation4 + $0x1], 0  ;;  %s488_s9 = smov 0   ;;  %s490_s10 = smov 0  }
   0x5   :  { %s492_s11 = smov 0   ;;  %s494_s12 = smov 0  }
   0x6 LB: > { %s509_s13 = sadd.s32 4294967295, %s470_s12   ;;  %s283_s14 = sadd.s32 4294967294, %s470_s12   ;;  %s470_s12 = sphi %s494_s12, %s638_s12   ;;  %s466_s11 = sphi %s492_s11, %s637_s11   ;;  %s462_s10 = sphi %s490_s10, %s636_s10   ;;  %s458_s9 = sphi %s488_s9, %s635_s9  }
   0x7   : > { %p60_p0 = scmp.ne.s32.totalorder %s462_s10, %s458_s9  ;;  %p61_p1 = scmp.eq.s32.totalorder %s509_s13, 0 }
   0x8   : > { %p84_p2 = scmp.eq.s32.totalorder %s509_s13, 1  ;;  %p90_p3 = scmp.eq.s32.totalorder %s283_s14, 1 }
   0x9   : > { %p518_p4 = por %p61_p1, %p60_p0  ;;  %p284_p5 = scmp.ge.s32.totalorder %s470_s12, 1 }
   0xa   : > { %p523_p6 = por %p90_p3, %p60_p0  ;;  %p97_p7 = scmp.lt.s32.totalorder %s470_s12, 3 }
   0xb   : > { %s109_s19 = sshll.u32 %s626_s0, 4  ;;  %s539_s21 = sadd.s32 1, %s470_s12   ;;  %s110_s19 = int_to_ptr.hbm [resolvable:$true] %s109_s19 }
   0xc   : > { %p531_p8 = pnand %p284_p5, %p97_p7  ;;  %s44_s22 = ssub.s32 %s470_s12, %s539_s21 }
   0xd   : > { %p45_p12 = scmp.eq.s32.totalorder %s44_s22, 0  ;;  %s47_s23 = sadd.s32 1, %s466_s11 }
   0xe   : > { %p306_p10 = pneg %p531_p8  ;;  %p54_p13 = scmp.ne.s32.totalorder %s466_s11, %s462_s10 }
   0xf   : > { %s472_s24 = smov [#allocation2]   ;;  %p55_p0 = scmp.eq.s32.totalorder %s470_s12, 0 }
  0x10   : > { %p307_p11 = pnand %p306_p10, %p61_p1  ;;  %p554_p3 = por %p84_p2, %p54_p13 }
  0x11   : > { %s549_s25 = scalar_select %p45_p12, %s466_s11, %s47_s23  }
  0x12   : > { %309 = dma.hbm_to_smem (!%p307_p11), %s110_s19, 16, %s472_s24, [#allocation5]  }
  0x13   : > { %s120_s27 = sand.u32 1, %s466_s11   ;;  %p56_p5 = por %p55_p0, %p54_p13 }
  0x14   : > { %p319_p7 = scmp.lt.s32.totalorder %s470_s12, 2  ;;  %s287_s28 = sshll.u32 %s120_s27, 3 }
  0x15   : > { %s288_s29 = sshll.u32 %s470_s12, 3  ;;  %s124_s6 = scalar_lea.vmem [#allocation6], %s287_s28 }
  0x16   : > { %s128_s4 = scalar_lea.hbm %s627_s1, %s288_s29  ;;  %s132_s7 = sshll.u32 %s124_s6, 4  ;;  %s133_s7 = int_to_ptr.vmem [resolvable:$true] %s132_s7 }
  0x17   : > { %s130_s5 = sshll.u32 %s128_s4, 4  ;;  %p564_p10 = pnand %p319_p7, %p56_p5  ;;  %s131_s5 = int_to_ptr.hbm [resolvable:$true] %s130_s5 }
  0x18   : > { %s121_s14 = scalar_lea.sflag [#allocation3], %s120_s27  ;;  %s370_s17 = sshra.s32 %s131_s5, 4  ;;  %s371_s17 = int_to_ptr.hbm [resolvable:$true] %s370_s17 }
  0x19   : > { %s372_s18 = scalar_lea.hbm %s371_s17, 8  ;;  %p374_p11 = pneg %p564_p10 }
  0x1a   : > { %p373_p2 = scmp.ne.s32.totalorder %s371_s17, %s372_s18  ;;  %s377_s23 = scalar_lea.hbm %s627_s1, 16 }
  0x1b   : > { %p378_p0 = scmp.lt.s32.totalorder %s371_s17, %s627_s1  ;;  %p379_p5 = scmp.lt.s32.totalorder %s377_s23, %s372_s18 }
  0x1c   : > { %p375_p12 = pnand %p374_p11, %p373_p2 }
  0x1d   : > { %p380_p7 = por %p379_p5, %p378_p0 }
  0x1e   : > { %p376_p13 = pneg %p375_p12 }
  0x20   : > { %p381_p9 = pnand %p380_p7, %p376_p13 }
  0x22   : > { %384 = shalt.err (!%p381_p9)
}
  0x23   : > { %313 = dma.hbm_to_vmem [thread:$0]  (!%p564_p10), %s131_s5, 128, %s133_s7, %s121_s14  }
  0x24   : > { %141 = sbr.rel (%p531_p8) target bundleno = 66 (0x42), region = 28 }
  0x29   : > { %445 = dma.done.wait (%p61_p1), [#allocation5], 16  }
  0x2a   : > { %447 = vsyncadd (%p61_p1), [#allocation5], 4294967280  ;;  %s585_s27 = sand.u32 1, %s462_s10  }
  0x2b   : > { %s291_s29 = sshll.u32 %s585_s27, 3  ;;  %s149_s30 = scalar_lea.sflag [#allocation3], %s585_s27 }
  0x2c   : > { %s152_s3 = scalar_lea.vmem [#allocation6], %s291_s29 }
  0x2d   : > { %449 = dma.done.wait (%p518_p4), %s149_s30, 128  }
  0x2e   : > { %451 = vsyncadd (%p518_p4), %s149_s30, 4294967168 }
  0x2f   : > { %158 = sfence }
  0x30   : > { %s175_s20 = sld [smem:[#allocation2]]  ;;  %v177_v0 = vld [vmem:[%s152_s3] sm:$0xff]  ;;  %s295_s5 = sshll.u32 %s509_s13, 3 }
  0x31   : > { %s293_s4 = sld [smem:[#allocation2 + $0x1]]  ;;  %s196_s8 = scalar_lea.hbm %s628_s2, %s295_s5 }
  0x32   : > { %s174_s14 = scalar_lea.vmem [#allocation7], %s291_s29  ;;  %s200_s15 = sshll.u32 %s196_s8, 4  ;;  %s201_s15 = int_to_ptr.hbm [resolvable:$true] %s200_s15 }
  0x33   : > { %s198_s17 = sshll.u32 %s174_s14, 4  ;;  %s186_s18 = scalar_lea.sflag [#allocation4], %s585_s27  ;;  %s199_s17 = int_to_ptr.vmem [resolvable:$true] %s198_s17 }
  0x34   : > { %s414_s19 = sshra.s32 %s201_s15, 4  ;;  %s420_s24 = scalar_lea.hbm %s628_s2, 16  ;;  %s415_s19 = int_to_ptr.hbm [resolvable:$true] %s414_s19 }
  0x35   : > { %s416_s13 = scalar_lea.hbm %s415_s19, 8  ;;  %p421_p9 = scmp.lt.s32.totalorder %s415_s19, %s628_s2 }
  0x36   : > { %v178_v1 = vstv %s175_s20  ;;  %p417_p1 = scmp.ne.s32.totalorder %s415_s19, %s416_s13  ;;  %p422_p10 = scmp.lt.s32.totalorder %s420_s24, %s416_s13 }
  0x37   : > { %v179_v2 = vmul.f32 %v178_v1, %v177_v0  ;;  %v180_v3 = vstv %s293_s4 }
  0x38   : > { %p418_p4 = pnand %p417_p1, %p554_p3  ;;  %p423_p2 = por %p422_p10, %p421_p9 }
  0x39   : > { %v181_v4 = vadd.f32 %v180_v3, %v179_v2 }
  0x3a   : > { %p419_p8 = pneg %p418_p4 }
  0x3b   : > { %v182_v5 = vmax.f32 %v181_v4, 0.0 }
  0x3c   : > { %p424_p11 = pnand %p423_p2, %p419_p8 }
  0x3d   : > { %v183_v6 = vmin.f32 %v182_v5, 1.0 }
  0x3f   : > { %184 = vst [vmem:[%s174_s14] sm:$0xff] %v183_v6 }
  0x40   : > { %427 = shalt.err (!%p424_p11)
}
  0x41   : > { %304 = dma.vmem_to_hbm [thread:$0]  (%p554_p3), %s199_s17, 128, %s201_s15, %s186_s18  }
  0x42 PF: > { %s212_s27 = sand.u32 1, %s458_s9   ;;  %p634_p12 = scmp.ge.s32.totalorder %s470_s12, 2 }
  0x43   : > { %s213_s30 = scalar_lea.sflag [#allocation4], %s212_s27 }
  0x44   : > { %p315_p13 = pnand %p634_p12, %p523_p6 }
  0x46   : > { %p316_p0 = pneg %p315_p13 }
  0x48   : > { %453 = dma.done.wait (%p316_p0), %s213_s30, 128  }
  0x49   : > { %455 = vsyncadd (%p316_p0), %s213_s30, 4294967168  ;;  %p16_p5 = scmp.ge.s32.totalorder %s539_s21, 4   ;;  %s635_s9 = smov %s462_s10 }
  0x4a   : > { %s636_s10 = smov %s466_s11  ;;  %s637_s11 = smov %s549_s25 }
  0x4b   : > { %s638_s12 = smov %s539_s21  ;;  %18 = sbr.rel (!%p16_p5) target bundleno = 6 (0x6), region = 78 }
  0x50   :  { %219 = vsyncpa [#allocation3], 1 }
  0x51   :  { %221 = vsyncpa [#allocation3 + $0x1], 1 }
  0x52   :  { %222 = vsyncpa [#allocation4], 1 }
  0x53   :  { %224 = vsyncpa [#allocation4 + $0x1], 1 }
  0x54   :  { %225 = vsyncpa [#allocation5], 1 }
  0x55   :  { %227 = vsyncpa [#allocation5 + $0x1], 1 }

</bundles_post_ra>
